<compile_context>
chip_gen: v7x
topology: tpu7x:2x2x1
jax: 0.10.0
libtpu: 0.0.40
codegen_flags: <defaults>
</compile_context>

<pallas_src>
import functools

import jax
import jax.numpy as jnp
from jax import lax
from jax.experimental import pallas as pl
from jax.experimental.pallas import tpu as pltpu


def _round_up(x, m):
    return (x + m - 1) // m * m


# ----------------------------------------------------------------------------
# Fused Pallas kernel
# ----------------------------------------------------------------------------
def _update_net_kernel(tok_ref, w_ref, b_ref, theta_ref, rmask_ref, o_ref, acc_ref,
                       *, mode, n_total, v_width, tile_n, need_mask):
    t = pl.program_id(1)                              # sequence tile (reduction axis, last)

    @pl.when(t == 0)
    def _():
        acc_ref[...] = jnp.zeros_like(acc_ref)

    # Single fused projection ([V | K] columns, head-major): bf16 MXU, f32 accumulate.
    tok = tok_ref[0]                                                  # (TN, in_dim) bf16
    kv = jnp.dot(tok, w_ref[...], preferred_element_type=jnp.float32) + b_ref[...]
    v = kv[:, :v_width]                                               # (TN, H*e)    f32
    k = kv[:, v_width:]                                               # (TN, H*dkp)  f32
    k = k * jax.nn.sigmoid(k)                                         # SiLU (EUP), f32

    row = lax.broadcasted_iota(jnp.int32, (tile_n, 1), 0)
    pos = t * tile_n + row                                            # global seq position

    if mode in ("cosine", "rope"):
        idx = (n_total - 1 - pos).astype(jnp.float32)                 # (TN, 1)
        angle = idx * theta_ref[...]                                  # (TN, H*dkp)
        cos = jnp.cos(angle)
        sin = jnp.sin(angle)
        if mode == "rope":
            width = k.shape[1]
            m = rmask_ref[...]                                        # (2, H*dkp), {-1,0,+1}
            k_left = pltpu.roll(k, width - 1, 1)                      # k[:, j+1]
            k_right = pltpu.roll(k, 1, 1)                             # k[:, j-1]
            k_half = m[0:1, :] * k_left + m[1:2, :] * k_right         # rotate-half (signed)
            k_all = k * cos + k_half * sin                            # (TN, H*dkf)
        else:                                                         # cosine
            k_all = jnp.concatenate([k * cos, k * sin], axis=-1)      # (TN, 2*H*dkp)
    else:                                                             # additive
        k_all = k

    if need_mask:
        v = jnp.where(pos < n_total, v, 0.0)                          # zero padded rows

    # One full-width outer-product matmul contracting the sequence axis (no .T):
    # (TN, H*dkf)^T @ (TN, H*e) -> (H*dkf, H*e).  bf16 operands, f32 accumulation.
    acc_ref[...] += lax.dot_general(
        k_all.astype(tok.dtype), v.astype(tok.dtype),
        dimension_numbers=(((0,), (0,)), ((), ())),
        preferred_element_type=jnp.float32)

    @pl.when(t == pl.num_programs(1) - 1)
    def _():
        o_ref[0] = acc_ref[...]                       # single lane-dense writeback per batch


# ----------------------------------------------------------------------------
# Wrapper (layout plumbing + pallas_call)
# ----------------------------------------------------------------------------
def update_net_forward(token, proj_weight, proj_bias, theta_buf, *,
                       update_net_type, v_dim, tile_n=512, matmul_dtype=jnp.bfloat16):
    """token: (B, N, in_dim).  proj_weight: (out_dim, in_dim) (PyTorch Linear layout).
    proj_bias: (out_dim,) or None.  theta_buf: (in_dim, 1, d_theta)."""
    B, N, in_dim = token.shape
    out_dim = proj_weight.shape[0]
    assert out_dim % in_dim == 0
    H = in_dim                                        # heads == in_dim
    d = out_dim // in_dim
    dkp = d - v_dim                                   # per-head k width from the projection
    dkf = 2 * dkp if update_net_type == "cosine" else dkp   # k width after position mixing
    e = v_dim
    VW = H * e                                        # fused-weight V lane width (first)
    KWp = H * dkp                                     # fused-weight K lane width (second)
    KW = H * dkf                                      # accumulator row count

    # Fused projection weight / bias: [V columns | K columns], head-major inside each.
    wt = proj_weight.astype(jnp.float32).T.reshape(in_dim, H, d)
    w_fused = jnp.concatenate(
        [wt[:, :, dkp:].reshape(in_dim, VW), wt[:, :, :dkp].reshape(in_dim, KWp)],
        axis=1).astype(matmul_dtype)
    if proj_bias is not None:
        br = proj_bias.astype(jnp.float32).reshape(H, d)
        b_fused = jnp.concatenate(
            [br[:, dkp:].reshape(1, VW), br[:, :dkp].reshape(1, KWp)], axis=1)
    else:
        b_fused = jnp.zeros((1, VW + KWp), jnp.float32)

    # Position-mixing constants (resident in VMEM across all grid steps).
    if update_net_type == "rope":
        th = jnp.repeat(theta_buf.reshape(H, dkf // 2), 2, axis=-1)   # interleave x2
        theta_flat = th.reshape(1, KWp).astype(jnp.float32)
        j = jnp.arange(KWp)
        rmask = jnp.stack([jnp.where(j % 2 == 0, -1.0, 0.0),          # even lanes: -k[j+1]
                           jnp.where(j % 2 == 1, 1.0, 0.0)]           # odd lanes:  +k[j-1]
                          ).astype(jnp.float32)                       # (2, KWp)
    elif update_net_type == "cosine":
        theta_flat = theta_buf.reshape(1, KWp).astype(jnp.float32)
        rmask = jnp.zeros((2, KWp), jnp.float32)                      # unused
    else:                                                             # additive
        theta_flat = jnp.zeros((1, KWp), jnp.float32)                 # unused
        rmask = jnp.zeros((2, KWp), jnp.float32)                      # unused

    # Sequence tiling (reduction axis, last grid dim).  Sublane quantum depends on dtype.
    q = 8 if jnp.dtype(matmul_dtype).itemsize >= 4 else 16
    tn = min(_round_up(tile_n, q), _round_up(N, q))
    n_pad = _round_up(N, tn)
    n_tiles = n_pad // tn
    tok = token.astype(matmul_dtype)
    if n_pad != N:
        tok = jnp.pad(tok, ((0, 0), (0, n_pad - N), (0, 0)))

    kernel = functools.partial(
        _update_net_kernel, mode=update_net_type, n_total=N,
        v_width=VW, tile_n=tn, need_mask=(n_pad != N))

    full = pl.pallas_call(
        kernel,
        out_shape=jax.ShapeDtypeStruct((B, KW, VW), jnp.float32),
        grid=(B, n_tiles),
        in_specs=[
            pl.BlockSpec((1, tn, in_dim), lambda b, t: (b, t, 0)),
            pl.BlockSpec((in_dim, VW + KWp), lambda b, t: (0, 0)),
            pl.BlockSpec((1, VW + KWp), lambda b, t: (0, 0)),
            pl.BlockSpec((1, KWp), lambda b, t: (0, 0)),
            pl.BlockSpec((2, KWp), lambda b, t: (0, 0)),
        ],
        out_specs=pl.BlockSpec((1, KW, VW), lambda b, t: (b, 0, 0)),
        scratch_shapes=[pltpu.VMEM((KW, VW), jnp.float32)],
        compiler_params=pltpu.CompilerParams(
            dimension_semantics=("parallel", "arbitrary")),
    )(tok, w_fused, b_fused, theta_flat, rmask)

    # Block-diagonal extraction + transpose to the PyTorch output layout (tiny, wrapper).
    if update_net_type == "cosine":
        full6 = full.reshape(B, 2, H, dkp, H, e)
        diag = jnp.diagonal(full6, axis1=2, axis2=4)       # (B, 2, dkp, e, H)
        out = jnp.moveaxis(diag, -1, 1).reshape(B, H, dkf, e)
    else:
        full5 = full.reshape(B, H, dkf, H, e)
        diag = jnp.diagonal(full5, axis1=1, axis2=3)       # (B, dkf, e, H)
        out = jnp.moveaxis(diag, -1, 1)                    # (B, H, dkf, e)
    return out


# ----------------------------------------------------------------------------
# Buffers / pure-JAX reference (mirrors the PyTorch module exactly)
# ----------------------------------------------------------------------------
def make_theta(update_net_type, in_dim, v_dim, base):
    out_dim = int(in_dim * 1.5 * v_dim) if update_net_type == "cosine" else in_dim * 2 * v_dim
    d_extra = out_dim - in_dim * v_dim
    if update_net_type == "cosine":
        theta = base ** (-2.0 / d_extra * jnp.arange(d_extra, dtype=jnp.float32))
    else:
        theta = base ** (-2.0 / d_extra * jnp.arange(d_extra // 2, dtype=jnp.float32))
    return theta.reshape(in_dim, 1, -1)


def update_net_reference(token, proj_weight, proj_bias, theta_buf, *,
                         update_net_type, v_dim, in_dim, matmul_dtype=None):
    """Module math in f32; if matmul_dtype is given, the operands of the two
    matmuls are rounded to that dtype (mirrors the kernel's bf16 MXU inputs)."""
    def _r(x):
        x = jnp.asarray(x, jnp.float32)
        if matmul_dtype is not None:
            x = x.astype(matmul_dtype).astype(jnp.float32)
        return x

    kv = jnp.einsum("bni,oi->bno", _r(token), _r(proj_weight), precision="highest")
    if proj_bias is not None:
        kv = kv + proj_bias.astype(jnp.float32)
    b, n, _ = token.shape
    d = proj_weight.shape[0] // in_dim
    kv = kv.reshape(b, n, in_dim, d).transpose(0, 2, 1, 3)          # b h n d
    k, v = kv[..., : d - v_dim], kv[..., d - v_dim:]
    k = k * jax.nn.sigmoid(k)
    if update_net_type in ("cosine", "rope"):
        index = (n - 1 - jnp.arange(n, dtype=jnp.float32)).reshape(-1, 1)
        theta = theta_buf * index                                    # (h, n, dt)
        if update_net_type == "cosine":
            k = jnp.concatenate([k * jnp.cos(theta), k * jnp.sin(theta)], axis=-1)
        else:
            theta = jnp.repeat(theta, 2, axis=-1)
            k_half = jnp.stack([-k[..., 1::2], k[..., ::2]], axis=-1).reshape(k.shape)
            k = k * jnp.cos(theta) + k_half * jnp.sin(theta)
    wm = jnp.einsum("bhnd,bhne->bdeh", _r(k), _r(v), precision="highest")
    return wm.transpose(0, 3, 1, 2)                                  # (b, in_dim, d_k, e)


# ----------------------------------------------------------------------------
# Demo
# ----------------------------------------------------------------------------
if __name__ == "__main__":
    cfg = dict(num_h_patch=16, num_w_patch=16, sample_step=4,
               hidden_channels=8, bias=False, base=10000.0)
    B, N = 2, 20
    in_dim = cfg["hidden_channels"]
    v_dim = cfg["num_h_patch"]
    key = jax.random.PRNGKey(0)

    for i, mode in enumerate(("rope", "cosine", "additive")):
        kw, kx = jax.random.split(jax.random.fold_in(key, i))
        out_dim = int(in_dim * 1.5 * v_dim) if mode == "cosine" else in_dim * 2 * v_dim
        d = out_dim // in_dim
        dkf = 2 * (d - v_dim) if mode == "cosine" else d - v_dim
        w = (1.0 / in_dim ** 0.5) * jax.random.normal(kw, (out_dim, in_dim), jnp.float32)
        token = jax.random.normal(kx, (B, N, in_dim), jnp.float32)
        theta_buf = make_theta(mode, in_dim, v_dim, cfg["base"])

        # Reference mirroring the kernel's bf16 matmul-operand rounding (all other
        # math in f32, exactly as the module).
        y_ref = update_net_reference(token, w, None, theta_buf,
                                     update_net_type=mode, v_dim=v_dim,
                                     in_dim=in_dim, matmul_dtype=jnp.bfloat16)

        # Default (large) sequence tile, plus a small tile that exercises the
        # multi-tile accumulation + padded-row masking path.
        for tile_n in (512, 16):
            y = update_net_forward(token, w, None, theta_buf,
                                   update_net_type=mode, v_dim=v_dim, tile_n=tile_n)
            y = jax.block_until_ready(y)
            assert y.shape == (B, in_dim, dkf, v_dim), (mode, tile_n, y.shape)
            assert bool(jnp.all(jnp.isfinite(y))), (mode, tile_n)
            err = float(jnp.max(jnp.abs(y - y_ref)))
            assert err < 2e-2, (mode, tile_n, err)

    print("KERNEL_OK")
</pallas_src>

<mosaic_0001>
module attributes {stable_mosaic.version = 11 : i64} {
  func.func @_update_net_kernel(%arg0: i32, %arg1: i32, %arg2: memref<1x32x8xbf16, #tpu.memory_space<vmem>>, %arg3: memref<8x256xbf16, #tpu.memory_space<vmem>>, %arg4: memref<1x256xf32, #tpu.memory_space<vmem>>, %arg5: memref<1x128xf32, #tpu.memory_space<vmem>>, %arg6: memref<2x128xf32, #tpu.memory_space<vmem>>, %arg7: memref<1x128x128xf32, #tpu.memory_space<vmem>>, %arg8: memref<128x128xf32, #tpu.memory_space<vmem>>) attributes {dimension_semantics = [#tpu.dimension_semantics<parallel>, #tpu.dimension_semantics<arbitrary>], iteration_bounds = array<i64: 2, 1>, scalar_prefetch = 0 : i64, scratch_operands = 1 : i64, tpu.core_type = #tpu.core_type<tc>, window_params = [{transform_indices = @transform_0, window_bounds = array<i64: 1, 32, 8>}, {pipeline_mode = #tpu.pipeline_mode<synchronous>, transform_indices = @transform_1, window_bounds = array<i64: 8, 256>}, {pipeline_mode = #tpu.pipeline_mode<synchronous>, transform_indices = @transform_2, window_bounds = array<i64: 1, 256>}, {pipeline_mode = #tpu.pipeline_mode<synchronous>, transform_indices = @transform_3, window_bounds = array<i64: 1, 128>}, {pipeline_mode = #tpu.pipeline_mode<synchronous>, transform_indices = @transform_4, window_bounds = array<i64: 2, 128>}, {transform_indices = @transform_5, window_bounds = array<i64: 1, 128, 128>}]} {
    %c0_i32 = arith.constant 0 : i32
    %0 = arith.cmpi eq, %arg1, %c0_i32 : i32
    %1 = arith.extui %0 : i1 to i32
    %c0_i32_0 = arith.constant 0 : i32
    %2 = arith.cmpi ne, %1, %c0_i32_0 : i32
    scf.if %2 {
      %cst_20 = arith.constant 0.000000e+00 : f32
      %59 = vector.broadcast %cst_20 : f32 to vector<128x128xf32>
      %c0_21 = arith.constant 0 : index
      %c0_22 = arith.constant 0 : index
      %60 = vector.load %arg8[%c0_21, %c0_22] : memref<128x128xf32, #tpu.memory_space<vmem>>, vector<128x128xf32>
      tpu.vector_store %arg8[%c0_21, %c0_22], %59 {strides = array<i32>} : memref<128x128xf32, #tpu.memory_space<vmem>>, vector<128x128xf32>,
    } else {
    }
    %c0 = arith.constant 0 : index
    %c0_1 = arith.constant 0 : index
    %c0_2 = arith.constant 0 : index
    %3 = vector.load %arg2[%c0, %c0_1, %c0_2] : memref<1x32x8xbf16, #tpu.memory_space<vmem>>, vector<1x32x8xbf16>
    %4 = vector.shape_cast %3 : vector<1x32x8xbf16> to vector<32x8xbf16>
    %c0_3 = arith.constant 0 : index
    %c0_4 = arith.constant 0 : index
    %5 = vector.load %arg3[%c0_3, %c0_4] : memref<8x256xbf16, #tpu.memory_space<vmem>>, vector<8x256xbf16>
    %cst = arith.constant dense<0.000000e+00> : vector<32x256xf32>
    %6 = tpu.matmul %4, %5, %cst {dimension_numbers = #tpu.dot_dimension_numbers<[1], [0], [0], [1], [0, 0, 1, 1], [], []>} : vector<32x8xbf16>, vector<8x256xbf16>, vector<32x256xf32> -> vector<32x256xf32>
    %c0_5 = arith.constant 0 : index
    %c0_6 = arith.constant 0 : index
    %7 = vector.load %arg4[%c0_5, %c0_6] : memref<1x256xf32, #tpu.memory_space<vmem>>, vector<1x256xf32>
    %8 = vector.broadcast %7 : vector<1x256xf32> to vector<32x256xf32>
    %9 = arith.addf %6, %8 : vector<32x256xf32>
    %10 = vector.extract_strided_slice %9 {offsets = [0, 0], sizes = [32, 128], strides = [1, 1]} : vector<32x256xf32> to vector<32x128xf32>
    %11 = vector.extract_strided_slice %9 {offsets = [0, 128], sizes = [32, 128], strides = [1, 1]} : vector<32x256xf32> to vector<32x128xf32>
    %12 = arith.negf %11 : vector<32x128xf32>
    %13 = math.exp %12 : vector<32x128xf32>
    %cst_7 = arith.constant 1.000000e+00 : f32
    %14 = vector.broadcast %cst_7 : f32 to vector<32x128xf32>
    %15 = arith.addf %14, %13 : vector<32x128xf32>
    %16 = arith.divf %14, %15 : vector<32x128xf32>
    %17 = arith.mulf %11, %16 : vector<32x128xf32>
    %18 = tpu.iota {dimensions = array<i32: 0>} : vector<32x1xi32>
    %c32_i32 = arith.constant 32 : i32
    %19 = arith.muli %arg1, %c32_i32 : i32
    %20 = vector.broadcast %19 : i32 to vector<32x1xi32>
    %21 = arith.addi %20, %18 : vector<32x1xi32>
    %c19_i32 = arith.constant 19 : i32
    %22 = vector.broadcast %c19_i32 : i32 to vector<32x1xi32>
    %23 = arith.subi %22, %21 : vector<32x1xi32>
    %24 = arith.sitofp %23 : vector<32x1xi32> to vector<32x1xf32>
    %c0_8 = arith.constant 0 : index
    %c0_9 = arith.constant 0 : index
    %25 = vector.load %arg5[%c0_8, %c0_9] : memref<1x128xf32, #tpu.memory_space<vmem>>, vector<1x128xf32>
    %26 = vector.broadcast %24 : vector<32x1xf32> to vector<32x128xf32>
    %27 = vector.broadcast %25 : vector<1x128xf32> to vector<32x128xf32>
    %28 = arith.mulf %26, %27 : vector<32x128xf32>
    %29 = math.cos %28 : vector<32x128xf32>
    %30 = math.sin %28 : vector<32x128xf32>
    %c0_10 = arith.constant 0 : index
    %c0_11 = arith.constant 0 : index
    %31 = vector.load %arg6[%c0_10, %c0_11] : memref<2x128xf32, #tpu.memory_space<vmem>>, vector<2x128xf32>
    %c127_i32 = arith.constant 127 : i32
    %32 = tpu.dynamic_rotate %17 by %c127_i32 dim 1 : vector<32x128xf32>, i32 -> vector<32x128xf32>
    %c1_i32 = arith.constant 1 : i32
    %33 = tpu.dynamic_rotate %17 by %c1_i32 dim 1 : vector<32x128xf32>, i32 -> vector<32x128xf32>
    %34 = vector.extract_strided_slice %31 {offsets = [0, 0], sizes = [1, 128], strides = [1, 1]} : vector<2x128xf32> to vector<1x128xf32>
    %35 = vector.broadcast %34 : vector<1x128xf32> to vector<32x128xf32>
    %36 = arith.mulf %35, %32 : vector<32x128xf32>
    %37 = vector.extract_strided_slice %31 {offsets = [1, 0], sizes = [1, 128], strides = [1, 1]} : vector<2x128xf32> to vector<1x128xf32>
    %38 = vector.broadcast %37 : vector<1x128xf32> to vector<32x128xf32>
    %39 = arith.mulf %38, %33 : vector<32x128xf32>
    %40 = arith.addf %36, %39 : vector<32x128xf32>
    %41 = arith.mulf %17, %29 : vector<32x128xf32>
    %42 = arith.mulf %40, %30 : vector<32x128xf32>
    %43 = arith.addf %41, %42 : vector<32x128xf32>
    %c20_i32 = arith.constant 20 : i32
    %44 = vector.broadcast %c20_i32 : i32 to vector<32x1xi32>
    %45 = arith.cmpi slt, %21, %44 : vector<32x1xi32>
    %cst_12 = arith.constant 0.000000e+00 : f32
    %46 = vector.shape_cast %45 : vector<32x1xi1> to vector<32x1xi1>
    %47 = vector.broadcast %46 : vector<32x1xi1> to vector<32x128xi1>
    %48 = vector.broadcast %cst_12 : f32 to vector<32x128xf32>
    %49 = arith.select %47, %10, %48 : vector<32x128xi1>, vector<32x128xf32>
    %c0_13 = arith.constant 0 : index
    %c0_14 = arith.constant 0 : index
    %50 = vector.load %arg8[%c0_13, %c0_14] : memref<128x128xf32, #tpu.memory_space<vmem>>, vector<128x128xf32>
    %51 = arith.truncf %43 : vector<32x128xf32> to vector<32x128xbf16>
    %52 = arith.truncf %49 : vector<32x128xf32> to vector<32x128xbf16>
    %cst_15 = arith.constant dense<0.000000e+00> : vector<128x128xf32>
    %53 = tpu.matmul %51, %52, %cst_15 {dimension_numbers = #tpu.dot_dimension_numbers<[0], [0], [1], [1], [0, 1, 1, 1], [], []>} : vector<32x128xbf16>, vector<32x128xbf16>, vector<128x128xf32> -> vector<128x128xf32>
    %54 = arith.addf %50, %53 : vector<128x128xf32>
    %c0_16 = arith.constant 0 : index
    %c0_17 = arith.constant 0 : index
    %55 = vector.load %arg8[%c0_16, %c0_17] : memref<128x128xf32, #tpu.memory_space<vmem>>, vector<128x128xf32>
    tpu.vector_store %arg8[%c0_16, %c0_17], %54 {strides = array<i32>} : memref<128x128xf32, #tpu.memory_space<vmem>>, vector<128x128xf32>,
    %c0_i32_18 = arith.constant 0 : i32
    %56 = arith.cmpi eq, %arg1, %c0_i32_18 : i32
    %57 = arith.extui %56 : i1 to i32
    %c0_i32_19 = arith.constant 0 : i32
    %58 = arith.cmpi ne, %57, %c0_i32_19 : i32
    scf.if %58 {
      %c0_20 = arith.constant 0 : index
      %c0_21 = arith.constant 0 : index
      %59 = vector.load %arg8[%c0_20, %c0_21] : memref<128x128xf32, #tpu.memory_space<vmem>>, vector<128x128xf32>
      %c0_22 = arith.constant 0 : index
      %c0_23 = arith.constant 0 : index
      %c0_24 = arith.constant 0 : index
      %60 = vector.load %arg7[%c0_22, %c0_23, %c0_24] : memref<1x128x128xf32, #tpu.memory_space<vmem>>, vector<1x128x128xf32>
      %61 = vector.shape_cast %60 : vector<1x128x128xf32> to vector<128x128xf32>
      %62 = vector.shape_cast %59 : vector<128x128xf32> to vector<1x128x128xf32>
      tpu.vector_store %arg7[%c0_22, %c0_23, %c0_24], %62 {strides = array<i32>} : memref<1x128x128xf32, #tpu.memory_space<vmem>>, vector<1x128x128xf32>,
    } else {
    }
    return
  }
  func.func @transform_0(%arg0: i32, %arg1: i32) -> (i32, i32, i32) {
    %c0_i32 = arith.constant 0 : i32
    %c0_i32_0 = arith.constant 0 : i32
    return %arg0, %arg1, %c0_i32 : i32, i32, i32
  }
  func.func @transform_1(%arg0: i32, %arg1: i32) -> (i32, i32) {
    %c0_i32 = arith.constant 0 : i32
    %c0_i32_0 = arith.constant 0 : i32
    %c0_i32_1 = arith.constant 0 : i32
    return %c0_i32, %c0_i32_0 : i32, i32
  }
  func.func @transform_2(%arg0: i32, %arg1: i32) -> (i32, i32) {
    %c0_i32 = arith.constant 0 : i32
    %c0_i32_0 = arith.constant 0 : i32
    %c0_i32_1 = arith.constant 0 : i32
    return %c0_i32, %c0_i32_0 : i32, i32
  }
  func.func @transform_3(%arg0: i32, %arg1: i32) -> (i32, i32) {
    %c0_i32 = arith.constant 0 : i32
    %c0_i32_0 = arith.constant 0 : i32
    %c0_i32_1 = arith.constant 0 : i32
    return %c0_i32, %c0_i32_0 : i32, i32
  }
  func.func @transform_4(%arg0: i32, %arg1: i32) -> (i32, i32) {
    %c0_i32 = arith.constant 0 : i32
    %c0_i32_0 = arith.constant 0 : i32
    %c0_i32_1 = arith.constant 0 : i32
    return %c0_i32, %c0_i32_0 : i32, i32
  }
  func.func @transform_5(%arg0: i32, %arg1: i32) -> (i32, i32, i32) {
    %c0_i32 = arith.constant 0 : i32
    %c0_i32_0 = arith.constant 0 : i32
    %c0_i32_1 = arith.constant 0 : i32
    return %arg0, %c0_i32, %c0_i32_0 : i32, i32, i32
  }
}

</mosaic_0001>

<bundles_post_ra>
// kernel: tpu_custom_call.1
= control target key start
LH: loop header
LB: loop body
LE: loop exit
PB: predicated region body
PF: predicated region fallthrough
CT: control target
= control target key end

     0   :  { %10 = vsyncpa [#allocation4], 0  ;;  %s2714_s0 = inlined_call_operand.vmem [shape: bf16[2,32,8], index: 0, kind: input, shape index: {}]   ;;  %s2715_s1 = inlined_call_operand.vmem [shape: bf16[8,256], index: 1, kind: input, shape index: {}]   ;;  %s2716_s2 = inlined_call_operand.vmem [shape: f32[1,256], index: 2, kind: input, shape index: {}]   ;;  %s2717_s3 = inlined_call_operand.vmem [shape: f32[1,128], index: 3, kind: input, shape index: {}]   ;;  %s2718_s4 = inlined_call_operand.vmem [shape: f32[2,128], index: 4, kind: input, shape index: {}]   ;;  %s2719_s5 = inlined_call_operand.hbm [shape: f32[2,128,128], index: 5, kind: output, shape index: {}]  }
   0x1   :  { %12 = vsyncpa [#allocation4 + $0x1], 0  ;;  %s1985_s18 = smov 0   ;;  %s1987_s19 = smov 0  }
   0x2   :  { %s1989_s20 = smov 0   ;;  %s1991_s21 = smov 0  }
   0x3   :  { %s1993_s22 = smov 0   ;;  %s1995_s23 = smov 0  }
   0x4 LB: > { %s1637_s24 = sadd.s32 4294967295, %s1939_s23   ;;  %s1638_s25 = sadd.s32 4294967294, %s1939_s23   ;;  %s1939_s23 = sphi %s1995_s23, %s18_s23   ;;  %s1935_s22 = sphi %s1993_s22, %s2736_s22   ;;  %s1931_s21 = sphi %s1991_s21, %s2735_s21   ;;  %s1927_s20 = sphi %s1989_s20, %s2734_s20   ;;  %s1923_s19 = sphi %s1987_s19, %s2733_s19   ;;  %s1919_s18 = sphi %s1985_s18, %s2732_s18  }
   0x5   : > { %s30_s26 = sadd.s32 1, %s1935_s22  ;;  %s149_s27 = sadd.s32 1, %s1927_s20 }
   0x6   : > { %p32_p0 = scmp.ge.s32.totalorder %s30_s26, 2  ;;  %p159_p1 = scmp.ne.s32.totalorder %s1927_s20, %s1923_s19 }
   0x7   : > { %p160_p2 = scmp.eq.s32.totalorder %s1637_s24, 1  ;;  %p165_p3 = scmp.ne.s32.totalorder %s1923_s19, %s1919_s18 }
   0x8   : > { %s2738_s26 = smov (%p32_p0, %s30_s26), 0  ;;  %p166_p5 = scmp.eq.s32.totalorder %s1638_s25, 1 }
   0x9   : > { %p2025_p4 = por %p160_p2, %p159_p1  ;;  %s146_s29 = ssub.s32 %s1935_s22, %s2738_s26 }
   0xa   : > { %p1641_p6 = scmp.ge.s32.totalorder %s1939_s23, 1  ;;  %p147_p7 = scmp.eq.s32.totalorder %s146_s29, 0 }
   0xb   : > { %p2032_p8 = por %p166_p5, %p165_p3  ;;  %p209_p9 = scmp.lt.s32.totalorder %s1939_s23, 3 }
   0xc   : > { %s2038_s6 = scalar_select %p147_p7, %s1927_s20, %s149_s27  }
   0xd   : > { %p210_p10 = pnand %p1641_p6, %p209_p9 }
   0xe   : > { %v276_v0 = vld [vmem:[%s2715_s1] sm:$0xff] (!%p210_p10)  ;;  %vm311_vm0 = vcmask (!%p210_p10), 1043456   ;;  %p242_p11 = scmp.lt.s32.totalorder (!%p210_p10), %s1931_s21, 1  ;;  %v1941_v3 = vmov (!%p210_p10), 0   ;;  %vm304_vm1 = vcmask (!%p210_p10), 64512   ;;  %v279_v7 = vlaneseq (!%p210_p10)  ;;  %s1950_s24 = smov (!%p210_p10), 1  }
   0xf   : > { %213 = sbr.rel (%p210_p10) target bundleno = 766 (0x2fe), region = 40  ;;  %v1648_v1 = vcombine.high (!%p210_p10), %v276_v0, %v276_v0  ;;  %v1647_v2 = vcombine.low (!%p210_p10), %v276_v0, %v276_v0  ;;  %350 = vmatprep.mubr.bf16.mxu0 (!%p210_p10), %v1941_v3  ;;  %v1656_v11 = vld [vmem:[%s2717_s3] ss:$0 sm:$0xff] (!%p210_p10)  ;;  %v1942_v39 = vmov (!%p210_p10), 2102212464   ;;  %vm1948_vm10 = vmmov (!%p210_p10), 1  }
  0x10   : > { %v2048_v8 = vshrl.u32 (!%p210_p10), %v279_v7, 7  ;;  %v1943_v41 = vmov (!%p210_p10), 920167782   ;;  %v1944_v45 = vmov (!%p210_p10), 683565275   ;;  %s1951_s25 = smov (!%p210_p10), 127  }
  0x11   : > { %1649 = vmatprep.subr.msk.bf16.mxu0 (!%p210_p10), %vm311_vm0, %v1648_v1  ;;  %v313_v4 = vsel (!%p210_p10), %vm311_vm0, %v1647_v2, 0  ;;  %v1945_v47 = vmov (!%p210_p10), 2475754826   ;;  %v1946_v51 = vmov (!%p210_p10), 2131351028   ;;  %s238_s7 = sand.u32 (!%p210_p10), 1, %s1923_s19  }
  0x12   : > { %319 = vmatpush1.bf16.msra.mxu0 (!%p210_p10), %v313_v4  ;;  %v410_v9 = vsub.s32 (!%p210_p10), 19, %v2048_v8  ;;  %v401_v13 = vadd.s32 (!%p210_p10), 8, %v2048_v8  ;;  %v2059_v16 = vadd.s32 (!%p210_p10), 16, %v2048_v8  ;;  %v403_v29 = vadd.s32 (!%p210_p10), 24, %v2048_v8  ;;  %v277_v58 = vld [vmem:[%s2716_s2] sm:$0x3] (!%p210_p10) }
  0x13   : > { %v285_v59 = vsub.s32 (!%p210_p10), 1, %v2048_v8  ;;  %v281_v60 = vsub.s32 (!%p210_p10), 0, %v2048_v8  ;;  %v1947_v7 = vmov (!%p210_p10), 1326507024   ;;  %s1642_s8 = sshll.u32 (!%p210_p10), %s238_s7, 7  ;;  %s1952_s16 = smov (!%p210_p10), [#allocation3]  }
  0x14   : > { %v414_v10 = vcvt.s32.f32 (!%p210_p10), %v410_v9  ;;  %v411_v15 = vsub.s32 (!%p210_p10), 19, %v401_v13  ;;  %v412_v19 = vsub.s32 (!%p210_p10), 19, %v2059_v16  ;;  %v413_v33 = vsub.s32 (!%p210_p10), 19, %v403_v29  ;;  %s1865_s17 = sshll.u32 (!%p210_p10), %s1952_s16, 4  ;;  %s1866_s17 = int_to_ptr.vmem [resolvable:$false] %s1865_s17 }
  0x15   : > { %v2106_v4 = vrot.slane (!%p210_p10), %v277_v58, %v285_v59  ;;  %vm1308_vm9 = vcmp.lt.s32.totalorder (!%p210_p10), %v2059_v16, 20 }
  0x16   : > { %s243_s9 = scalar_select %p242_p11, %s1931_s21, 1  ;;  %v2054_v12 = vmul.f32 %v1656_v11, %v414_v10  ;;  %v415_v18 = vcvt.s32.f32 %v411_v15  ;;  %v416_v22 = vcvt.s32.f32 %v412_v19  ;;  %v417_v37 = vcvt.s32.f32 %v413_v33  ;;  %vm2172_vm11 = vmpackc.low %vm1948_vm10, %vm1308_vm9 }
  0x17   : > { %v282_v10 = vrot.slane %v277_v58, %v281_v60 }
  0x18   : > { %s1705_s10 = sshll.u32 %s243_s9, 4  ;;  %v432_v14 = vand.u32 2139095040, %v2054_v12  ;;  %v2062_v21 = vmul.f32 %v1656_v11, %v415_v18  ;;  %v2065_v25 = vmul.f32 %v1656_v11, %v416_v22  ;;  %v429_v38 = vand.u32 2147483647, %v2054_v12  ;;  %s2639_s9 = scalar_lea.vmem [#allocation3], %s1642_s8 }
  0x19   : > { %s249_s13 = scalar_lea.vmem %s2714_s0, %s1705_s10  ;;  %v2076_v49 = vmul.f32 %v1656_v11, %v417_v37  ;;  %s1706_s10 = sshll.u32 %s1931_s21, 11 }
  0x1a   : > { %v1827_v5 = vld [vmem:[%s249_s13] sm:$0xff]   ;;  %v1828_v6 = vld [vmem:[%s249_s13 + $0x8] sm:$0xff]   ;;  %v433_v17 = vshrl.u32 %v432_v14, 23  ;;  %v535_v24 = vand.u32 2139095040, %v2062_v21  ;;  %v638_v28 = vand.u32 2139095040, %v2065_v25  ;;  %s1561_s11 = sshll.u32 %s2639_s9, 4  ;;  %s2659_s14 = scalar_lea.hbm %s2719_s5, %s1706_s10  ;;  %s2661_s11 = int_to_ptr.vmem [resolvable:$true] %s1561_s11 }
  0x1b   : > { %1650 = vmatmul.mubr.msk.bf16.vlgmr.msra.gmra.mrb[0].mxu0 %vm304_vm1, %v1827_v5  ;;  %v436_v55 = vand.u32 8388607, %v429_v38  ;;  %v741_v61 = vand.u32 2139095040, %v2076_v49  ;;  %s2668_s21 = scalar_lea.sflag [#allocation4], %s238_s7  ;;  %s1861_s15 = scalar_lea.vmem %s2661_s11, 2048 }
  0x1c   : > { %360 = vmatprep.mubr.bf16.mxu0 %v1941_v3  ;;  %v1657_v20 = vadd.s32 4294967169, %v433_v17  ;;  %v536_v27 = vshrl.u32 %v535_v24, 23  ;;  %v639_v32 = vshrl.u32 %v638_v28, 23  ;;  %p1862_p12 = scmp.ne.s32.totalorder %s2661_s11, %s1861_s15  ;;  %p1868_p1 = scmp.lt.s32.totalorder %s2661_s11, %s1866_s17 }
  0x1d   : > { %v437_v2 = vor.u32 8388608, %v436_v55 }
  0x1e   : > { %v439_v23 = vadd.s32 1, %v1657_v20  ;;  %v1661_v31 = vadd.s32 4294967169, %v536_v27  ;;  %v1665_v36 = vadd.s32 4294967169, %v639_v32  ;;  %v742_v20 = vshrl.u32 %v741_v61, 23  ;;  %p1863_p13 = pnand %p1862_p12, %p2025_p4 }
  0x1f   : > { %v2125_v18 = vshll.u32 %v437_v2, 8  ;;  %v532_v27 = vand.u32 2147483647, %v2062_v21 }
  0x20   : > { %vm440_vm2 = vcmp.gt.s32.totalorder %v439_v23, 0  ;;  %v542_v35 = vadd.s32 1, %v1661_v31  ;;  %v645_v44 = vadd.s32 1, %v1665_v36  ;;  %p1864_p0 = pneg %p1863_p13 }
  0x21   : > { %v441_v26 = vsel %vm440_vm2, %v439_v23, 0 }
  0x22   : > { %v443_v30 = vand.u32 31, %v441_v26  ;;  %v2072_v43 = vshrl.u32 %v441_v26, 5  ;;  %vm543_vm3 = vcmp.gt.s32.totalorder %v542_v35, 0  ;;  %vm646_vm5 = vcmp.gt.s32.totalorder %v645_v44, 0 }
  0x23   : > { %1651 = vmatmul.mubr.msk.bf16.gmra.mrb[4].mxu0 %vm304_vm1, %v1828_v6  ;;  %v544_v57 = vsel %vm543_vm3, %v542_v35, 0  ;;  %v2108_v5 = vsel %vm646_vm5, %v645_v44, 0 }
  0x24   : > { %v444_v34 = vsub.s32 32, %v443_v30  ;;  %v455_v40 = vshll.u32 %v1942_v39, %v443_v30  ;;  %v446_v46 = vshll.u32 %v1944_v45, %v443_v30  ;;  %v449_v50 = vshll.u32 %v1945_v47, %v443_v30 }
  0x25   : > { %v452_v53 = vshll.u32 %v1946_v51, %v443_v30  ;;  %vm464_vm4 = vcmp.lt.s32.totalorder %v2072_v43, 4  ;;  %v546_v1 = vand.u32 31, %v544_v57  ;;  %vm461_vm6 = vcmp.lt.s32.totalorder %v2072_v43, 1 }
  0x26   : > { %v456_v42 = vshrl.u32 %v1943_v41, %v444_v34  ;;  %v447_v48 = vshrl.u32 %v1945_v47, %v444_v34  ;;  %v450_v52 = vshrl.u32 %v1946_v51, %v444_v34  ;;  %v453_v54 = vshrl.u32 %v1942_v39, %v444_v34 }
  0x27   : > { %vm463_vm7 = vcmp.lt.s32.totalorder %v2072_v43, 3  ;;  %v458_v6 = vshll.u32 %v1943_v41, %v443_v30  ;;  %v459_v9 = vshrl.u32 %v1947_v7, %v444_v34  ;;  %vm462_vm8 = vcmp.lt.s32.totalorder %v2072_v43, 2 }
  0x28   : > { %v2084_v56 = vor.u32 %v456_v42, %v455_v40  ;;  %v2093_v62 = vor.u32 %v447_v48, %v446_v46  ;;  %v2095_v63 = vor.u32 %v450_v52, %v449_v50  ;;  %v2097_v0 = vor.u32 %v453_v54, %v452_v53 }
  0x29   : > { %v2123_v17 = vand.u32 31, %v2108_v5  ;;  %v2127_v19 = vsub.s32 32, %v546_v1  ;;  %v2133_v24 = vshrl.u32 %v1944_v45, %v444_v34  ;;  %v460_v26 = vor.u32 %v459_v9, %v458_v6 }
  0x2a   : > { %v470_v3 = vsel %vm464_vm4, %v2084_v56, 920167782  ;;  %v469_v13 = vsel %vm461_vm6, %v2093_v62, %v2095_v63  ;;  %v2140_v32 = vshrl.u32 %v544_v57, 5  ;;  %v549_v34 = vshll.u32 %v1944_v45, %v546_v1 }
  0x2b   : > { %v471_v14 = vsel %vm463_vm7, %v2097_v0, %v470_v3  ;;  %v552_v36 = vshll.u32 %v1945_v47, %v546_v1  ;;  %v558_v40 = vshll.u32 %v1942_v39, %v546_v1  ;;  %v559_v42 = vshrl.u32 %v1943_v41, %v2127_v19 }
  0x2c   : > { %v2138_v31 = vsel %vm462_vm8, %v469_v13, %v471_v14  ;;  %v561_v44 = vshll.u32 %v1943_v41, %v546_v1  ;;  %v562_v48 = vshrl.u32 %v1947_v7, %v2127_v19  ;;  %v1669_v50 = vadd.s32 4294967169, %v742_v20 }
  0x2d   : > { %v550_v52 = vshrl.u32 %v1945_v47, %v2127_v19  ;;  %v555_v53 = vshll.u32 %v1946_v51, %v546_v1  ;;  %v553_v55 = vshrl.u32 %v1946_v51, %v2127_v19  ;;  %v556_v57 = vshrl.u32 %v1942_v39, %v2127_v19 }
  0x2e   : > { %v474_v2 = vsel %vm464_vm4, %v460_v26, 1326507024  ;;  %v539_v3 = vand.u32 8388607, %v532_v27  ;;  %v560_v6 = vor.u32 %v559_v42, %v558_v40  ;;  %vm567_vm12 = vcmp.lt.s32.totalorder %v2140_v32, 4 }
  0x2f   : > { %v748_v13 = vadd.s32 1, %v1669_v50  ;;  %v1949_v14 = vmov 0.0   ;;  %vm564_vm13 = vcmp.lt.s32.totalorder %v2140_v32, 1  ;;  %vm566_vm14 = vcmp.lt.s32.totalorder %v2140_v32, 3 }
  0x30   : > { %v473_v40 = vsel %vm461_vm6, %v2095_v63, %v2097_v0  ;;  %v475_v42 = vsel %vm463_vm7, %v2084_v56, %v474_v2  ;;  %vm565_vm0 = vcmp.lt.s32.totalorder %v2140_v32, 2  ;;  %v661_v43 = vshll.u32 %v1942_v39, %v2123_v17 }
  0x31   : > { %vm749_vm15 = vcmp.gt.s32.totalorder %v748_v13, 0 }
  0x32   : > { %v750_v56 = vsel %vm749_vm15, %v748_v13, 0 }
  0xee   : > { %v352_v11 = vpop.f32.mrb[0].mxu0 }
  0xef   : > { %v354_v15 = vpop.f32.mrb[1].mxu0  ;;  %v353_v28 = vadd.f32 %v352_v11, %v282_v10 }
  0xf0   : > { %v2130_v22 = vadd.f32 %v354_v15, %v2106_v4  ;;  %v356_v23 = vpop.f32.mrb[2].mxu0 }
  0xf1   : > { %v357_v29 = vadd.f32 %v356_v23, %v282_v10  ;;  %v358_v30 = vpop.f32.mrb[3].mxu0  ;;  %v2179_v23 = vmul.u32.u64.low %v2125_v18, %v2138_v31  ;;  %v2180_v26 = vmul.u32.u64.high %v2125_v18, %v2138_v31, %v2179_v23  ;;  %v573_v31 = vsel %vm567_vm12, %v560_v6, 920167782 }
  0xf2   : > { %v1652_v33 = vmul.f32 -1.442695, %v2130_v22  ;;  %v2144_v35 = vadd.f32 %v358_v30, %v2106_v4  ;;  %v2187_v30 = vor.u32 %v553_v55, %v552_v36  ;;  %v466_v36 = vsel %vm464_vm4, %v2097_v0, 2102212464 }
  0xf3   : > { %v1340_v37 = vpack.c.bf16 %v357_v29, %v353_v28  ;;  %v551_v28 = vor.u32 %v550_v52, %v549_v34  ;;  %v465_v55 = vsel %vm461_vm6, %v2133_v24, %v2093_v62  ;;  %v467_v2 = vsel %vm463_vm7, %v2095_v63, %v466_v36 }
  0xf4   : > { %1829 = vpow2.f32 %v1652_v33  ;;  %v1653_v46 = vmul.f32 -1.442695, %v2144_v35  ;;  %v557_v33 = vor.u32 %v556_v57, %v555_v53  ;;  %v476_v57 = vsel %vm462_vm8, %v473_v40, %v475_v42 }
  0xf5   : > { %1717 = vmatprep.subr.bf16.mxu0 %v1340_v37  ;;  %1737 = vmatprep.subr.bf16.mxu1 %v1340_v37  ;;  %v548_v62 = vshrl.u32 %v1944_v45, %v2127_v19  ;;  %v635_v63 = vand.u32 2147483647, %v2065_v25  ;;  %v2259_v13 = vsel %vm462_vm8, %v465_v55, %v467_v2 }
  0xf6   : > { %1831 = vpow2.f32 %v1653_v46  ;;  %v362_v54 = vpop.f32.mrb[4].mxu0  ;;  %1718 = vmatpush3.bf16.msra.mxu0 %v1340_v37  ;;  %1739 = vmatpush3.bf16.msra.mxu1 %v1340_v37  ;;  %v540_v37 = vor.u32 8388608, %v539_v3  ;;  %v572_v46 = vsel %vm564_vm13, %v551_v28, %v2187_v30  ;;  %v576_v0 = vsel %vm564_vm13, %v2187_v30, %v557_v33 }
  0xf7   : > { %v363_v58 = vadd.f32 %v362_v54, %v282_v10  ;;  %v364_v61 = vpop.f32.mrb[5].mxu0  ;;  %v563_v10 = vor.u32 %v562_v48, %v561_v44  ;;  %v574_v48 = vsel %vm566_vm14, %v557_v33, %v573_v31  ;;  %v2226_v54 = vsub.s32 32, %v2123_v17 }
  0xf8   : > { %v2168_v1 = vadd.f32 %v364_v61, %v2106_v4  ;;  %v366_v9 = vpop.f32.mrb[6].mxu0  ;;  %v2241_v3 = vsel %vm565_vm0, %v572_v46, %v574_v48  ;;  %v2282_v31 = vsel %vm564_vm13, %v548_v62, %v551_v28  ;;  %v2292_v42 = vsel %vm567_vm12, %v557_v33, 2102212464 }
  0xf9   : > { %v1690_v15 = vpack.c.bf16 %v1949_v14, %v363_v58  ;;  %v368_v20 = vpop.f32.mrb[7].mxu0  ;;  %v577_v34 = vsel %vm567_vm12, %v563_v10, 1326507024  ;;  %v2234_v58 = vshll.u32 %v540_v37, 8  ;;  %v752_v9 = vand.u32 31, %v750_v56 }
  0xfa   : > { %v1654_v16 = vmul.f32 -1.442695, %v2168_v1  ;;  %v2185_v29 = vadd.f32 %v368_v20, %v2106_v4  ;;  %v578_v52 = vsel %vm566_vm14, %v560_v6, %v577_v34  ;;  %v2244_v6 = vshrl.u32 %v2108_v5, 5 }
  0xfb   : > { %1719 = vmatprep.subr.msk.bf16.mxu0 %vm2172_vm11, %v1690_v15  ;;  %1738 = vmatprep.subr.msk.bf16.mxu1 %vm2172_vm11, %v1690_v15  ;;  %v2250_v24 = vsel %vm565_vm0, %v576_v0, %v578_v52  ;;  %v2253_v11 = vmul.u32.u64.low %v2125_v18, %v476_v57  ;;  %v2254_v10 = vmul.u32.u64.high %v2125_v18, %v476_v57, %v2253_v11  ;;  %v2262_v5 = vadd.s32 1, %v2180_v26 }
  0xfc   : > { %1833 = vpow2.f32 %v1654_v16  ;;  %v1655_v4 = vmul.f32 -1.442695, %v2185_v29  ;;  %1720 = vmatpush3.bf16.msk.msra.mxu0 %vm2172_vm11, %v1690_v15  ;;  %1740 = vmatpush3.bf16.msk.msra.mxu1 %vm2172_vm11, %v1690_v15  ;;  %v2266_v19 = vmul.u32.u64.low %v2234_v58, %v2241_v3  ;;  %v2267_v14 = vmul.u32.u64.high %v2234_v58, %v2241_v3, %v2266_v19 }
  0xfd   : > { %v2272_v15 = vmul.u32.u64.low %v2234_v58, %v2250_v24  ;;  %v2273_v20 = vmul.u32.u64.high %v2234_v58, %v2250_v24, %v2272_v15  ;;  %v662_v16 = vshrl.u32 %v1943_v41, %v2226_v54  ;;  %v665_v34 = vshrl.u32 %v1947_v7, %v2226_v54 }
  0xfe   : > { %v1830_v44 = vpop.eup %1829  ;;  %1835 = vpow2.f32 %v1655_v4  ;;  %v664_v4 = vshll.u32 %v1943_v41, %v2123_v17  ;;  %v2288_v36 = vsub.s32 32, %v752_v9  ;;  %v652_v28 = vshll.u32 %v1944_v45, %v2123_v17 }
  0xff   : > { %v383_v50 = vadd.f32 1.0, %v1830_v44  ;;  %v2296_v44 = vand.u32 8388607, %v635_v63  ;;  %v653_v48 = vshrl.u32 %v1945_v47, %v2226_v54  ;;  %v656_v0 = vshrl.u32 %v1946_v51, %v2226_v54 }
 0x100   : > { %v1832_v53 = vpop.eup %1831  ;;  %v658_v33 = vshll.u32 %v1946_v51, %v2123_v17  ;;  %v663_v55 = vor.u32 %v662_v16, %v661_v43  ;;  %v666_v57 = vor.u32 %v665_v34, %v664_v4  ;;  %v764_v2 = vshll.u32 %v1942_v39, %v752_v9 }
 0x101   : > { %1837 = vrcp.f32 %v383_v50  ;;  %v384_v61 = vadd.f32 1.0, %v1832_v53  ;;  %v655_v50 = vshll.u32 %v1945_v47, %v2123_v17  ;;  %v659_v53 = vshrl.u32 %v1942_v39, %v2226_v54 }
 0x102   : > { %v765_v3 = vshrl.u32 %v1943_v41, %v2288_v36  ;;  %v2314_v24 = vshrl.u32 %v750_v56, 5  ;;  %v767_v17 = vshll.u32 %v1943_v41, %v752_v9  ;;  %v768_v11 = vshrl.u32 %v1947_v7, %v2288_v36 }
 0x103   : > { %1839 = vrcp.f32 %v384_v61  ;;  %v738_v61 = vand.u32 2147483647, %v2076_v49  ;;  %vm670_vm1 = vcmp.lt.s32.totalorder %v2244_v6, 4  ;;  %v755_v43 = vshll.u32 %v1944_v45, %v752_v9 }
 0x104   : > { %v758_v16 = vshll.u32 %v1945_v47, %v752_v9  ;;  %v756_v4 = vshrl.u32 %v1945_v47, %v2288_v36  ;;  %v759_v56 = vshrl.u32 %v1946_v51, %v2288_v36  ;;  %v761_v41 = vshll.u32 %v1946_v51, %v752_v9 }
 0x105   : > { %v762_v7 = vshrl.u32 %v1942_v39, %v2288_v36  ;;  %vm486_vm2 = vc.u32 %v2254_v10, %v2179_v23  ;;  %v643_v47 = vor.u32 8388608, %v2296_v44  ;;  %v2341_v34 = vor.u32 %v656_v0, %v655_v50 }
 0x106   : > { %v1834_v37 = vpop.eup %1833  ;;  %v766_v51 = vor.u32 %v765_v3, %v764_v2  ;;  %v660_v9 = vor.u32 %v659_v53, %v658_v33  ;;  %v745_v39 = vand.u32 8388607, %v738_v61  ;;  %vm773_vm3 = vcmp.lt.s32.totalorder %v2314_v24, 4 }
 0x107   : > { %v385_v40 = vadd.f32 1.0, %v1834_v37  ;;  %vm667_vm4 = vcmp.lt.s32.totalorder %v2244_v6, 1  ;;  %vm669_vm5 = vcmp.lt.s32.totalorder %v2244_v6, 3  ;;  %v676_v44 = vsel %vm670_vm1, %v663_v55, 920167782 }
 0x108   : > { %v1836_v46 = vpop.eup %1835  ;;  %v760_v50 = vor.u32 %v759_v56, %v758_v16  ;;  %v763_v0 = vor.u32 %v762_v7, %v761_v41  ;;  %vm668_vm6 = vcmp.lt.s32.totalorder %v2244_v6, 2  ;;  %vm770_vm7 = vcmp.lt.s32.totalorder %v2314_v24, 1 }
 0x109   : > { %1841 = vrcp.f32 %v385_v40  ;;  %v386_v52 = vadd.f32 1.0, %v1836_v46  ;;  %v769_v40 = vor.u32 %v768_v11, %v767_v17  ;;  %vm772_vm8 = vcmp.lt.s32.totalorder %v2314_v24, 3 }
 0x10a   : > { %v677_v53 = vsel %vm669_vm5, %v660_v9, %v676_v44  ;;  %v679_v17 = vsel %vm667_vm4, %v2341_v34, %v660_v9  ;;  %v683_v16 = vshll.u32 %v643_v47, 8  ;;  %vm771_vm9 = vcmp.lt.s32.totalorder %v2314_v24, 2 }
 0x10b   : > { %v1838_v62 = vpop.eup %1837  ;;  %1843 = vrcp.f32 %v386_v52  ;;  %v783_v2 = vsel %vm773_vm3, %v769_v40, 1326507024  ;;  %v590_v41 = vadd.s32 1, %v2267_v14  ;;  %v484_v47 = vmul.u32 %v2125_v18, %v2259_v13 }
 0x10c   : > { %v2320_v15 = vmul.f32 %v1838_v62, %v2130_v22  ;;  %v2339_v22 = vor.u32 %v653_v48, %v652_v28  ;;  %v680_v28 = vsel %vm670_vm1, %v666_v57, 1326507024  ;;  %v757_v48 = vor.u32 %v756_v4, %v755_v43 }
 0x10d   : > { %v1840_v37 = vpop.eup %1839  ;;  %v746_v57 = vor.u32 8388608, %v745_v39  ;;  %v570_v62 = vsel %vm566_vm14, %v2187_v30, %v2292_v42  ;;  %v681_v11 = vsel %vm669_vm5, %v663_v55, %v680_v28  ;;  %v782_v42 = vsel %vm770_vm7, %v760_v50, %v763_v0 }
 0x10e   : > { %1266 = vrot.lane.b32.xlu1 %v2320_v15, %s1950_s24  ;;  %1258 = vrot.lane.b32.xlu0 %v2320_v15, %s1951_s25  ;;  %v2347_v46 = vmul.f32 %v1840_v37, %v2144_v35  ;;  %v779_v35 = vsel %vm773_vm3, %v766_v51, 920167782  ;;  %v675_v52 = vsel %vm667_vm4, %v2339_v22, %v2341_v34  ;;  %v784_v55 = vsel %vm772_vm8, %v766_v51, %v783_v2 }
 0x10f   : > { %v780_v37 = vsel %vm772_vm8, %v763_v0, %v779_v35  ;;  %v678_v30 = vsel %vm668_vm6, %v675_v52, %v677_v53  ;;  %v571_v56 = vsel %vm565_vm0, %v2282_v31, %v570_v62  ;;  %v786_v7 = vshll.u32 %v746_v57, 8 }
 0x110   : > { %vm589_vm10 = vc.u32 %v2273_v20, %v2266_v19  ;;  %v488_v32 = vsel %vm486_vm2, %v2262_v5, %v2180_v26  ;;  %v2419_v31 = vmul.u32.u64.low %v683_v16, %v678_v30  ;;  %v2420_v39 = vmul.u32.u64.high %v683_v16, %v678_v30, %v2419_v31 }
 0x111   : > { %v785_v40 = vsel %vm771_vm9, %v782_v42, %v784_v55  ;;  %v587_v18 = vmul.u32 %v2234_v58, %v571_v56  ;;  %v651_v13 = vshrl.u32 %v1944_v45, %v2226_v54  ;;  %v591_v26 = vsel %vm589_vm10, %v590_v41, %v2267_v14 }
 0x112   : > { %1268 = vrot.lane.b32.xlu1 %v2347_v46, %s1950_s24  ;;  %1260 = vrot.lane.b32.xlu0 %v2347_v46, %s1951_s25  ;;  %v672_v5 = vsel %vm670_vm1, %v660_v9, 2102212464  ;;  %v489_v52 = vadd.s32 %v488_v32, %v484_v47  ;;  %v754_v58 = vshrl.u32 %v1944_v45, %v2288_v36  ;;  %v775_v14 = vsel %vm773_vm3, %v763_v0, 2102212464 }
 0x113   : > { %v1842_v33 = vpop.eup %1841  ;;  %v2444_v54 = vmul.u32.u64.low %v786_v7, %v785_v40  ;;  %v2445_v53 = vmul.u32.u64.high %v786_v7, %v785_v40, %v2444_v54  ;;  %v592_v57 = vadd.s32 %v591_v26, %v587_v18  ;;  %v671_v9 = vsel %vm667_vm4, %v651_v13, %v2339_v22 }
 0x114   : > { %v2373_v3 = vmul.f32 %v1842_v33, %v2168_v1  ;;  %v778_v1 = vsel %vm770_vm7, %v757_v48, %v760_v50  ;;  %v673_v2 = vsel %vm669_vm5, %v2341_v34, %v672_v5  ;;  %v490_v62 = vadd.s32 536870912, %v489_v52 }
 0x115   : > { %v1844_v43 = vpop.eup %1843  ;;  %v781_v51 = vsel %vm771_vm9, %v778_v1, %v780_v37  ;;  %v776_v45 = vsel %vm772_vm8, %v760_v50, %v775_v14  ;;  %v674_v36 = vsel %vm668_vm6, %v671_v9, %v673_v2  ;;  %v693_v0 = vadd.s32 1, %v2420_v39 }
 0x116   : > { %v2390_v4 = vmul.f32 %v1844_v43, %v2185_v29  ;;  %1262 = vrot.lane.b32.xlu0 %v2373_v3, %s1951_s25  ;;  %v682_v29 = vsel %vm668_vm6, %v679_v17, %v681_v11  ;;  %v2436_v35 = vmul.u32.u64.low %v786_v7, %v781_v51  ;;  %v2437_v33 = vmul.u32.u64.high %v786_v7, %v781_v51, %v2436_v35 }
 0x117   : > { %v2430_v44 = vmul.u32.u64.low %v683_v16, %v682_v29  ;;  %v2431_v28 = vmul.u32.u64.high %v683_v16, %v682_v29, %v2430_v44  ;;  %v774_v17 = vsel %vm770_vm7, %v754_v58, %v757_v48  ;;  %v593_v11 = vadd.s32 536870912, %v592_v57 }
 0x118   : > { %1264 = vrot.lane.b32.xlu1 %v2390_v4, %s1951_s25  ;;  %v777_v22 = vsel %vm771_vm9, %v774_v17, %v776_v45  ;;  %v796_v34 = vadd.s32 1, %v2437_v33  ;;  %v2467_v43 = vshrl.u32 %v490_v62, 30  ;;  %v690_v48 = vmul.u32 %v683_v16, %v674_v36 }
 0x119   : > { %vm692_vm11 = vc.u32 %v2431_v28, %v2419_v31  ;;  %vm795_vm12 = vc.u32 %v2445_v53, %v2436_v35  ;;  %v2472_v50 = vshrl.u32 %v593_v11, 30  ;;  %v793_v1 = vmul.u32 %v786_v7, %v777_v22 }
 0x11a   : > { %1270 = vrot.lane.b32.xlu0 %v2373_v3, %s1950_s24  ;;  %v694_v6 = vsel %vm692_vm11, %v693_v0, %v2420_v39  ;;  %v797_v37 = vsel %vm795_vm12, %v796_v34, %v2437_v33  ;;  %v492_v30 = vshll.u32 %v2467_v43, 30  ;;  %v485_v22 = vadd.s32 %v2179_v23, %v2254_v10 }
 0x11b   : > { %v695_v42 = vadd.s32 %v694_v6, %v690_v48  ;;  %v595_v24 = vshll.u32 %v2472_v50, 30  ;;  %v798_v55 = vadd.s32 %v797_v37, %v793_v1  ;;  %v588_v1 = vadd.s32 %v2266_v19, %v2273_v20 }
 0x11c   : > { %1272 = vrot.lane.b32.xlu1 %v2390_v4, %s1950_s24  ;;  %v493_v56 = vsub.s32 %v489_v52, %v492_v30  ;;  %v691_v19 = vadd.s32 %v2419_v31, %v2431_v28  ;;  %vm431_vm1 = vcmp.lt.s32.totalorder %v2054_v12, 0  ;;  %vm534_vm2 = vcmp.lt.s32.totalorder %v2062_v21, 0  ;;  %s1867_s24 = scalar_lea.vmem %s1866_s17, 4096 }
 0x11d   : > { %v696_v41 = vadd.s32 536870912, %v695_v42  ;;  %v596_v29 = vsub.s32 %v592_v57, %v595_v24  ;;  %v799_v16 = vadd.s32 536870912, %v798_v55  ;;  %vm2500_vm3 = vcmp.le.f32.partialorder %v429_v38, 0.7853982  ;;  %p1869_p2 = scmp.lt.s32.totalorder %s1867_s24, %s1861_s15 }
 0x11e   : > { %v495_v47 = vsub.s32 0, %v493_v56  ;;  %vm2508_vm4 = vcmp.le.f32.partialorder %v532_v27, 0.7853982  ;;  %v515_v27 = vsub.s32 4, %v2467_v43  ;;  %vm637_vm5 = vcmp.lt.s32.totalorder %v2065_v25, 0 }
 0x11f   : > { %v2477_v51 = vshrl.u32 %v696_v41, 30  ;;  %v598_v32 = vsub.s32 0, %v596_v29  ;;  %v2479_v39 = vshrl.u32 %v799_v16, 30  ;;  %vm740_vm6 = vcmp.lt.s32.totalorder %v2076_v49, 0  ;;  %p1870_p3 = por %p1869_p2, %p1868_p1 }
 0x120   : > { %v1658_v40 = vmin.u32 %v495_v47, %v493_v56  ;;  %vm2529_vm7 = vcmp.le.f32.partialorder %v635_v63, 0.7853982  ;;  %vm2541_vm8 = vcmp.le.f32.partialorder %v738_v61, 0.7853982  ;;  %vm521_vm9 = vweird.f32 %v2054_v12 }
 0x121   : > { %v698_v7 = vshll.u32 %v2477_v51, 30  ;;  %v1662_v18 = vmin.u32 %v598_v32, %v596_v29  ;;  %v801_v13 = vshll.u32 %v2479_v39, 30  ;;  %p1871_p5 = pnand %p1870_p3, %p1864_p0 }
 0x122   : > { %v497_v44 = vclz %v1658_v40 }
 0x123   : > { %v699_v26 = vsub.s32 %v695_v42, %v698_v7  ;;  %v600_v5 = vclz %v1662_v18  ;;  %v2483_v33 = vsub.s32 %v798_v55, %v801_v13 }
 0x124   : > { %v1659_v52 = vadd.s32 4294967294, %v497_v44 }
 0x125   : > { %v701_v58 = vsub.s32 0, %v699_v26  ;;  %v1663_v54 = vadd.s32 4294967294, %v600_v5  ;;  %v804_v14 = vsub.s32 0, %v2483_v33 }
 0x126   : > { %vm1660_vm13 = vcmp.lt.s32.totalorder %v1659_v52, 0 }
 0x127   : > { %v1666_v57 = vmin.u32 %v701_v58, %v699_v26  ;;  %vm1664_vm14 = vcmp.lt.s32.totalorder %v1663_v54, 0  ;;  %v1670_v9 = vmin.u32 %v804_v14, %v2483_v33  ;;  %v500_v2 = vsel %vm1660_vm13, 0, %v1659_v52 }
 0x128   : > { %v603_v17 = vsel %vm1664_vm14, 0, %v1663_v54  ;;  %v505_v45 = vsub.s32 4294967266, %v500_v2  ;;  %v501_v34 = vsub.s32 32, %v500_v2  ;;  %v502_v42 = vshll.u32 %v493_v56, %v500_v2 }
 0x129   : > { %v703_v62 = vclz %v1666_v57  ;;  %v806_v36 = vclz %v1670_v9  ;;  %v608_v0 = vsub.s32 4294967266, %v603_v17  ;;  %v604_v37 = vsub.s32 32, %v603_v17 }
 0x12a   : > { %v506_v48 = vadd.s32 127, %v505_v45  ;;  %v503_v24 = vshrl.u32 %v485_v22, %v501_v34  ;;  %v605_v41 = vshll.u32 %v596_v29, %v603_v17  ;;  %v794_v29 = vadd.s32 %v2436_v35, %v2445_v53 }
 0x12b   : > { %v1667_v11 = vadd.s32 4294967294, %v703_v62  ;;  %v1671_v6 = vadd.s32 4294967294, %v806_v36  ;;  %v609_v30 = vadd.s32 127, %v608_v0  ;;  %v606_v16 = vshrl.u32 %v588_v1, %v604_v37 }
 0x12c   : > { %v507_v55 = vshll.u32 %v506_v48, 23  ;;  %v504_v7 = vor.u32 %v503_v24, %v502_v42  ;;  %vm624_vm14 = vweird.f32 %v2062_v21 }
 0x12d   : > { %vm1668_vm15 = vcmp.lt.s32.totalorder %v1667_v11, 0  ;;  %vm1672_vm0 = vcmp.lt.s32.totalorder %v1671_v6, 0  ;;  %v610_v32 = vshll.u32 %v609_v30, 23  ;;  %v607_v18 = vor.u32 %v606_v16, %v605_v41 }
 0x12e   : > { %v706_v47 = vsel %vm1668_vm15, 0, %v1667_v11  ;;  %v809_v40 = vsel %vm1672_vm0, 0, %v1671_v6  ;;  %v508_v23 = vor.u32 4788187, %v507_v55  ;;  %v511_v5 = vcvt.s32.f32 %v504_v7 }
 0x12f   : > { %v711_v10 = vsub.s32 4294967266, %v706_v47  ;;  %v611_v13 = vor.u32 4788187, %v610_v32  ;;  %v814_v44 = vsub.s32 4294967266, %v809_v40  ;;  %v707_v56 = vsub.s32 32, %v706_v47 }
 0x130   : > { %v509_v20 = vand.u32 2147483647, %v508_v23  ;;  %v614_v58 = vcvt.s32.f32 %v607_v18  ;;  %v810_v14 = vsub.s32 32, %v809_v40  ;;  %v708_v2 = vshll.u32 %v699_v26, %v706_v47 }
 0x131   : > { %v712_v52 = vadd.s32 127, %v711_v10  ;;  %v612_v54 = vand.u32 2147483647, %v611_v13  ;;  %v815_v57 = vadd.s32 127, %v814_v44  ;;  %v709_v62 = vshrl.u32 %v691_v19, %v707_v56 }
 0x132   : > { %v512_v9 = vmul.f32 %v511_v5, %v509_v20  ;;  %v811_v36 = vshll.u32 %v2483_v33, %v809_v40  ;;  %v812_v0 = vshrl.u32 %v794_v29, %v810_v14  ;;  %v618_v47 = vsub.s32 4, %v2472_v50 }
 0x133   : > { %v713_v17 = vshll.u32 %v712_v52, 23  ;;  %v615_v45 = vmul.f32 %v614_v58, %v612_v54  ;;  %v816_v31 = vshll.u32 %v815_v57, 23  ;;  %v710_v11 = vor.u32 %v709_v62, %v708_v2 }
 0x134   : > { %v513_v28 = vxor.u32 2147483648, %v512_v9  ;;  %v813_v48 = vor.u32 %v812_v0, %v811_v36  ;;  %v516_v40 = vsel %vm431_vm1, %v515_v27, %v2467_v43  ;;  %v619_v10 = vsel %vm534_vm2, %v618_v47, %v2472_v50  ;;  %v1257_v36 = vld [vmem:[%s2718_s4] sm:$0x3] }
 0x135   : > { %v714_v22 = vor.u32 4788187, %v713_v17  ;;  %v616_v34 = vxor.u32 2147483648, %v615_v45  ;;  %v817_v6 = vor.u32 4788187, %v816_v31  ;;  %v717_v33 = vcvt.s32.f32 %v710_v11 }
 0x136   : > { %v514_v53 = vsel %vm431_vm1, %v513_v28, %v512_v9  ;;  %v820_v42 = vcvt.s32.f32 %v813_v48  ;;  %v721_v18 = vsub.s32 4, %v2477_v51  ;;  %v518_v43 = vsel %vm2500_vm3, 0, %v516_v40 }
 0x137   : > { %v715_v26 = vand.u32 2147483647, %v714_v22  ;;  %v617_v37 = vsel %vm534_vm2, %v616_v34, %v615_v45  ;;  %v818_v30 = vand.u32 2147483647, %v817_v6  ;;  %v517_v38 = vsel %vm2500_vm3, %v2054_v12, %v514_v53 }
 0x138   : > { %v620_v55 = vsel %vm2508_vm4, %v2062_v21, %v617_v37  ;;  %1845 = vcosq.f32 %v517_v38  ;;  %v621_v50 = vsel %vm2508_vm4, 0, %v619_v10  ;;  %v934_v5 = vadd.s32 3, %v518_v43 }
 0x139   : > { %v718_v24 = vmul.f32 %v717_v33, %v715_v26  ;;  %v821_v41 = vmul.f32 %v820_v42, %v818_v30  ;;  %1847 = vsinq.f32 %v517_v38  ;;  %v722_v52 = vsel %vm637_vm5, %v721_v18, %v2477_v51 }
 0x13a   : > { %1849 = vcosq.f32 %v620_v55  ;;  %v522_v58 = vand.u32 3, %v518_v43  ;;  %v1038_v29 = vadd.s32 3, %v621_v50  ;;  %v824_v14 = vsub.s32 4, %v2479_v39 }
 0x13b   : > { %v719_v16 = vxor.u32 2147483648, %v718_v24  ;;  %1851 = vsinq.f32 %v620_v55  ;;  %v822_v32 = vxor.u32 2147483648, %v821_v41  ;;  %v625_v57 = vand.u32 3, %v621_v50 }
 0x13c   : > { %v935_v62 = vand.u32 3, %v934_v5  ;;  %v724_v17 = vsel %vm2529_vm7, 0, %v722_v52  ;;  %vm524_vm10 = vcmp.eq.s32.totalorder %v522_v58, 0  ;;  %vm527_vm11 = vcmp.eq.s32.totalorder %v522_v58, 2 }
 0x13d   : > { %v720_v23 = vsel %vm637_vm5, %v719_v16, %v718_v24  ;;  %v823_v63 = vsel %vm740_vm6, %v822_v32, %v821_v41  ;;  %v1039_v0 = vand.u32 3, %v1038_v29  ;;  %v825_v31 = vsel %vm740_vm6, %v824_v14, %v2479_v39 }
 0x13e   : > { %v723_v44 = vsel %vm2529_vm7, %v2065_v25, %v720_v23  ;;  %v826_v61 = vsel %vm2541_vm8, %v2076_v49, %v823_v63  ;;  %vm627_vm12 = vcmp.eq.s32.totalorder %v625_v57, 0  ;;  %vm630_vm13 = vcmp.eq.s32.totalorder %v625_v57, 2 }
 0x13f   : > { %1853 = vcosq.f32 %v723_v44  ;;  %v2571_v28 = vand.u32 3, %v724_v17  ;;  %vm523_vm15 = vcmp.lt.s32.totalorder %v522_v58, 2  ;;  %vm626_vm0 = vcmp.lt.s32.totalorder %v625_v57, 2 }
 0x140   : > { %1855 = vsinq.f32 %v723_v44  ;;  %vm937_vm1 = vcmp.eq.s32.totalorder %v935_v62, 0  ;;  %vm940_vm2 = vcmp.eq.s32.totalorder %v935_v62, 2  ;;  %v2575_v34 = vrot.slane %v1257_v36, %v285_v59 }
 0x141   : > { %1857 = vcosq.f32 %v826_v61  ;;  %v827_v48 = vsel %vm2541_vm8, 0, %v825_v31  ;;  %v2581_v35 = vrot.slane %v1257_v36, %v281_v60  ;;  %vm1041_vm3 = vcmp.eq.s32.totalorder %v1039_v0, 0 }
 0x142   : > { %v1846_v19 = vpop.eup %1845  ;;  %1859 = vsinq.f32 %v826_v61  ;;  %vm1044_vm4 = vcmp.eq.s32.totalorder %v1039_v0, 2  ;;  %v1142_v53 = vadd.s32 3, %v724_v17  ;;  %vm936_vm5 = vcmp.lt.s32.totalorder %v935_v62, 2 }
 0x143   : > { %v1848_v20 = vpop.eup %1847  ;;  %v528_v9 = vxor.u32 2147483648, %v1846_v19  ;;  %vm730_vm6 = vcmp.eq.s32.totalorder %v2571_v28, 0  ;;  %v2584_v37 = vand.u32 3, %v827_v48  ;;  %v1246_v30 = vadd.s32 3, %v827_v48 }
 0x144   : > { %v1850_v56 = vpop.eup %1849  ;;  %v525_v2 = vxor.u32 2147483648, %v1848_v20  ;;  %vm1040_vm7 = vcmp.lt.s32.totalorder %v1039_v0, 2  ;;  %vm733_vm8 = vcmp.eq.s32.totalorder %v2571_v28, 2  ;;  %v1143_v40 = vand.u32 3, %v1142_v53 }
 0x145   : > { %v1852_v54 = vpop.eup %1851  ;;  %v631_v51 = vxor.u32 2147483648, %v1850_v56  ;;  %v529_v22 = vsel %vm527_vm11, %v528_v9, %v1848_v20  ;;  %v942_v1 = vsel %vm940_vm2, %v528_v9, %v1848_v20  ;;  %vm832_vm11 = vcmp.lt.s32.totalorder %v2584_v37, 2 }
 0x146   : > { %v628_v45 = vxor.u32 2147483648, %v1852_v54  ;;  %v526_v11 = vsel %vm524_vm10, %v1846_v19, %v525_v2  ;;  %v939_v33 = vsel %vm937_vm1, %v1846_v19, %v525_v2  ;;  %vm729_vm10 = vcmp.lt.s32.totalorder %v2571_v28, 2 }
 0x147   : > { %v632_v6 = vsel %vm630_vm13, %v631_v51, %v1852_v54  ;;  %v530_v42 = vsel %vm523_vm15, %v526_v11, %v529_v22  ;;  %v1046_v41 = vsel %vm1044_vm4, %v631_v51, %v1852_v54  ;;  %v943_v47 = vsel %vm936_vm5, %v939_v33, %v942_v1 }
 0x148   : > { %v629_v39 = vsel %vm627_vm12, %v1850_v56, %v628_v45  ;;  %v1043_v55 = vsel %vm1041_vm3, %v1850_v56, %v628_v45  ;;  %v531_v10 = vsel %vm521_vm9, nan, %v530_v42  ;;  %v1247_v43 = vand.u32 3, %v1246_v30 }
 0x149   : > { %v1854_v26 = vpop.eup %1853  ;;  %v633_v38 = vsel %vm626_vm0, %v629_v39, %v632_v6  ;;  %v1047_v63 = vsel %vm1040_vm7, %v1043_v55, %v1046_v41  ;;  %v944_v44 = vsel %vm521_vm9, nan, %v943_v47  ;;  %vm836_vm12 = vcmp.eq.s32.totalorder %v2584_v37, 2 }
 0x14a   : > { %v1856_v59 = vpop.eup %1855  ;;  %v734_v23 = vxor.u32 2147483648, %v1854_v26  ;;  %v634_v18 = vsel %vm624_vm14, nan, %v633_v38  ;;  %vm1145_vm13 = vcmp.eq.s32.totalorder %v1143_v40, 0  ;;  %vm1148_vm15 = vcmp.eq.s32.totalorder %v1143_v40, 2 }
 0x14b   : > { %v1858_v8 = vpop.eup %1857  ;;  %v731_v7 = vxor.u32 2147483648, %v1856_v59  ;;  %v1048_v52 = vsel %vm624_vm14, nan, %v1047_v63  ;;  %vm833_vm9 = vcmp.eq.s32.totalorder %v2584_v37, 0  ;;  %vm1249_vm0 = vcmp.eq.s32.totalorder %v1247_v43, 0 }
 0x14c   : > { %v1860_v27 = vpop.eup %1859  ;;  %v837_v5 = vxor.u32 2147483648, %v1858_v8  ;;  %v735_v12 = vsel %vm733_vm8, %v734_v23, %v1856_v59  ;;  %vm1252_vm1 = vcmp.eq.s32.totalorder %v1247_v43, 2  ;;  %vm1144_vm2 = vcmp.lt.s32.totalorder %v1143_v40, 2 }
 0x14d   : > { %v834_v20 = vxor.u32 2147483648, %v1860_v27  ;;  %v732_v58 = vsel %vm730_vm6, %v1854_v26, %v731_v7  ;;  %v1147_v57 = vsel %vm1145_vm13, %v1854_v26, %v731_v7  ;;  %v1150_v9 = vsel %vm1148_vm15, %v734_v23, %v1856_v59 }
 0x14e   : > { %v838_v21 = vsel %vm836_vm12, %v837_v5, %v1860_v27  ;;  %v1294_v17 = vmul.f32 %v531_v10, %v2320_v15  ;;  %v1295_v45 = vmul.f32 %v634_v18, %v2347_v46  ;;  %vm1248_vm14 = vcmp.lt.s32.totalorder %v1247_v43, 2 }
 0x14f   : > { %v835_v62 = vsel %vm833_vm9, %v1858_v8, %v834_v20  ;;  %v1251_v36 = vsel %vm1249_vm0, %v1858_v8, %v834_v20  ;;  %v1254_v0 = vsel %vm1252_vm1, %v837_v5, %v1860_v27  ;;  %v1151_v31 = vsel %vm1144_vm2, %v1147_v57, %v1150_v9 }
 0x150   : > { %vm727_vm3 = vweird.f32 %v2065_v25  ;;  %v736_v48 = vsel %vm729_vm10, %v732_v58, %v735_v12  ;;  %vm830_vm4 = vweird.f32 %v2076_v49  ;;  %v839_v15 = vsel %vm832_vm11, %v835_v62, %v838_v21 }
 0x151   : > { %v1255_v53 = vsel %vm1248_vm14, %v1251_v36, %v1254_v0  ;;  %v1152_v33 = vsel %vm727_vm3, nan, %v1151_v31  ;;  %v737_v30 = vsel %vm727_vm3, nan, %v736_v48  ;;  %v840_v42 = vsel %vm830_vm4, nan, %v839_v15 }
 0x152   : > { %v1256_v49 = vsel %vm830_vm4, nan, %v1255_v53  ;;  %vm1358_vm5 = vcmask 261120  }
 0x180   : > { %v1267_v60 = vpop.permute.xlu1 %1266  ;;  %v1259_v24 = vpop.permute.xlu0 %1258 }
 0x181   : > { %v1286_v16 = vmul.f32 %v2575_v34, %v1267_v60  ;;  %v1278_v32 = vmul.f32 %v2581_v35, %v1259_v24  ;;  %v1296_v60 = vmul.f32 %v737_v30, %v2373_v3  ;;  %v1297_v24 = vmul.f32 %v840_v42, %v2390_v4 }
 0x183   : > { %v1290_v13 = vadd.f32 %v1286_v16, %v1278_v32 }
 0x184   : > { %v1269_v19 = vpop.permute.xlu1 %1268  ;;  %v1261_v50 = vpop.permute.xlu0 %1260 }
 0x185   : > { %v1287_v61 = vmul.f32 %v2575_v34, %v1269_v19  ;;  %v1279_v56 = vmul.f32 %v2581_v35, %v1261_v50  ;;  %v1298_v54 = vmul.f32 %v1290_v13, %v944_v44 }
 0x187   : > { %v1291_v29 = vadd.f32 %v1287_v61, %v1279_v56  ;;  %v1302_v11 = vadd.f32 %v1298_v54, %v1294_v17 }
 0x188   : > { %v1263_v14 = vpop.permute.xlu0 %1262 }
 0x189   : > { %v1299_v2 = vmul.f32 %v1291_v29, %v1048_v52  ;;  %v1280_v46 = vmul.f32 %v2581_v35, %v1263_v14 }
 0x18a   : > { %v1265_v51 = vpop.permute.xlu1 %1264 }
 0x18b   : > { %v1303_v22 = vadd.f32 %v1299_v2, %v1295_v45  ;;  %v1281_v59 = vmul.f32 %v2581_v35, %v1265_v51 }
 0x18c   : > { %v1271_v39 = vpop.permute.xlu0 %1270 }
 0x18d   : > { %v1288_v6 = vmul.f32 %v2575_v34, %v1271_v39  ;;  %v1338_v26 = vpack.c.bf16 %v1303_v22, %v1302_v11 }
 0x18e   : > { %v1273_v1 = vpop.permute.xlu1 %1272 }
 0x18f   : > { %v1292_v25 = vadd.f32 %v1288_v6, %v1280_v46  ;;  %v1289_v28 = vmul.f32 %v2575_v34, %v1273_v1  ;;  %1342 = vxpose.xlu0.c.b16.start [1/2] (short) %v1338_v26, 128 }
 0x191   : > { %v1300_v38 = vmul.f32 %v1292_v25, %v1152_v33  ;;  %v1293_v37 = vadd.f32 %v1289_v28, %v1281_v59 }
 0x193   : > { %v1301_v8 = vmul.f32 %v1293_v37, %v1256_v49  ;;  %v1304_v55 = vadd.f32 %v1300_v38, %v1296_v60 }
 0x195   : > { %v1305_v41 = vadd.f32 %v1301_v8, %v1297_v24 }
 0x197   : > { %v1339_v27 = vpack.c.bf16 %v1305_v41, %v1304_v55 }
 0x199   : > { %1343 = vxpose.xlu0.c.b16.end [2/2] (short) %v1339_v27, 128 }
 0x1fb   : > { %v1350_v35 = vpop.trf.xlu0 }
 0x1fc   : > { %1721 = vmatprep.mubr.msk.bf16.mxu0 %vm1358_vm5, %v1350_v35 }
 0x1ff   : > { %v1351_v34 = vpop.trf.xlu0 }
 0x200   : > { %1722 = vmatmul.mubr.msk.bf16.vlgmr.msra.gmra.mrb[8].mxu0 %vm1358_vm5, %v1351_v34 }
 0x203   : > { %v1352_v16 = vpop.trf.xlu0 }
 0x204   : > { %1725 = vmatprep.mubr.msk.bf16.mxu1 %vm1358_vm5, %v1352_v16 }
 0x207   : > { %v1353_v47 = vpop.trf.xlu0 }
 0x208   : > { %1726 = vmatmul.mubr.msk.bf16.vlgmr.msra.gmra.mrb[0].mxu1 %vm1358_vm5, %v1353_v47 }
 0x20b   : > { %v1354_v3 = vpop.trf.xlu0 }
 0x20c   : > { %1729 = vmatprep.mubr.msk.bf16.mxu1 %vm1358_vm5, %v1354_v3 }
 0x20f   : > { %v1355_v4 = vpop.trf.xlu0 }
 0x210   : > { %1730 = vmatmul.mubr.msk.bf16.gmra.mrb[4].mxu1 %vm1358_vm5, %v1355_v4 }
 0x213   : > { %v1356_v32 = vpop.trf.xlu0 }
 0x214   : > { %1733 = vmatprep.mubr.msk.bf16.mxu1 %vm1358_vm5, %v1356_v32 }
 0x217   : > { %v1357_v40 = vpop.trf.xlu0 }
 0x218   : > { %1734 = vmatmul.mubr.msk.bf16.gmra.mrb[8].mxu1 %vm1358_vm5, %v1357_v40 }
 0x2d3   : > { %v1723_v7 = vpop.f32.mrb[8].mxu0 }
 0x2d4   : > { %1533 = vst [vmem:[%s2639_s9 + $0x10] sm:$0xff] %v1723_v7  ;;  %v1417_v23 = vpop.f32.mrb[9].mxu0 }
 0x2d5   : > { %1531 = vst [vmem:[%s2639_s9] sm:$0xff] %v1417_v23  ;;  %v1724_v10 = vpop.f32.mrb[10].mxu0 }
 0x2d6   : > { %1534 = vst [vmem:[%s2639_s9 + $0x18] sm:$0xff] %v1724_v10  ;;  %v1420_v18 = vpop.f32.mrb[11].mxu0 }
 0x2d7   : > { %1532 = vst [vmem:[%s2639_s9 + $0x8] sm:$0xff] %v1420_v18 }
 0x2db   : > { %v1727_v13 = vpop.f32.mrb[0].mxu1 }
 0x2dc   : > { %1537 = vst [vmem:[%s2639_s9 + $0x30] sm:$0xff] %v1727_v13  ;;  %v1433_v63 = vpop.f32.mrb[1].mxu1 }
 0x2dd   : > { %1535 = vst [vmem:[%s2639_s9 + $0x20] sm:$0xff] %v1433_v63  ;;  %v1728_v43 = vpop.f32.mrb[2].mxu1 }
 0x2de   : > { %1538 = vst [vmem:[%s2639_s9 + $0x38] sm:$0xff] %v1728_v43  ;;  %v1436_v44 = vpop.f32.mrb[3].mxu1 }
 0x2df   : > { %1536 = vst [vmem:[%s2639_s9 + $0x28] sm:$0xff] %v1436_v44 }
 0x2e3   : > { %v1731_v19 = vpop.f32.mrb[4].mxu1 }
 0x2e4   : > { %1541 = vst [vmem:[%s2639_s9 + $0x50] sm:$0xff] %v1731_v19  ;;  %v1449_v50 = vpop.f32.mrb[5].mxu1 }
 0x2e5   : > { %1539 = vst [vmem:[%s2639_s9 + $0x40] sm:$0xff] %v1449_v50  ;;  %v1732_v20 = vpop.f32.mrb[6].mxu1 }
 0x2e6   : > { %1542 = vst [vmem:[%s2639_s9 + $0x58] sm:$0xff] %v1732_v20  ;;  %v1452_v5 = vpop.f32.mrb[7].mxu1 }
 0x2e7   : > { %1540 = vst [vmem:[%s2639_s9 + $0x48] sm:$0xff] %v1452_v5 }
 0x2eb   : > { %v1735_v61 = vpop.f32.mrb[8].mxu1 }
 0x2ec   : > { %1545 = vst [vmem:[%s2639_s9 + $0x70] sm:$0xff] %v1735_v61  ;;  %v1465_v56 = vpop.f32.mrb[9].mxu1 }
 0x2ed   : > { %1543 = vst [vmem:[%s2639_s9 + $0x60] sm:$0xff] %v1465_v56  ;;  %v1736_v52 = vpop.f32.mrb[10].mxu1 }
 0x2ee   : > { %1546 = vst [vmem:[%s2639_s9 + $0x78] sm:$0xff] %v1736_v52  ;;  %v1468_v58 = vpop.f32.mrb[11].mxu1 }
 0x2ef   : > { %1544 = vst [vmem:[%s2639_s9 + $0x68] sm:$0xff] %v1468_v58 }
 0x2f0   : > { %1874 = shalt.err (!%p1871_p5)
}
 0x2f1   : > { %s1875_s25 = scalar_lea.hbm %s2659_s14, 2048  ;;  %s1879_s7 = scalar_lea.hbm %s2719_s5, 4096 }
 0x2f2   : > { %p1876_p6 = scmp.ne.s32.totalorder %s2659_s14, %s1875_s25  ;;  %p1880_p10 = scmp.lt.u32.totalorder %s2659_s14, %s2719_s5 }
 0x2f3   : > { %p1881_p11 = scmp.lt.u32.totalorder %s1879_s7, %s1875_s25  ;;  %p1883_p13 = scmp.lt.u32.totalorder %s1875_s25, %s2659_s14 }
 0x2f4   : > { %p1877_p7 = pnand %p1876_p6, %p2025_p4 }
 0x2f5   : > { %p1882_p12 = por %p1881_p11, %p1880_p10 }
 0x2f6   : > { %p1878_p9 = pneg %p1877_p7 }
 0x2f7   : > { %p1884_p0 = por %p1883_p13, %p1882_p12 }
 0x2f9   : > { %p1885_p1 = pnand %p1884_p0, %p1878_p9 }
 0x2fb   : > { %1888 = shalt.err (!%p1885_p1)
}
 0x2fc   : > { %s1953_s10 = smov 128   ;;  %s1954_s12 = smov 8  }
 0x2fd   : > { %1757 = dma.vmem_to_hbm [thread:$0]  (%p2025_p4), %s2661_s11, 2048, %s2659_s14, %s2668_s21, %s1953_s10, %s1953_s10, %s1954_s12  }
 0x2fe PF: > { %p1763_p2 = scmp.ge.s32.totalorder %s1939_s23, 2  ;;  %s1576_s13 = sand.u32 1, %s1919_s18  }
 0x2ff   : > { %s1577_s15 = scalar_lea.sflag [#allocation4], %s1576_s13 }
 0x300   : > { %p1760_p3 = pnand %p1763_p2, %p2032_p8 }
 0x302   : > { %1914 = dma.done.wait (!%p1760_p3), %s1577_s15, 2048  }
 0x303   : > { %1916 = vsyncadd (!%p1760_p3), %s1577_s15, 4294965248  ;;  %s18_s23 = sadd.s32 1, %s1939_s23   ;;  %s2732_s18 = smov %s1923_s19 }
 0x304   : > { %p15_p5 = scmp.ge.s32.totalorder %s18_s23, 4   ;;  %s2733_s19 = smov %s1927_s20 }
 0x305   : > { %s2734_s20 = smov %s2038_s6  ;;  %s2735_s21 = smov %s1935_s22 }
 0x306   : > { %s2736_s22 = smov %s2738_s26  ;;  %17 = sbr.rel (!%p15_p5) target bundleno = 4 (0x4), region = 83 }
 0x30d   :  { %1582 = vsyncpa [#allocation4], 1 }
 0x30e   :  { %1584 = vsyncpa [#allocation4 + $0x1], 1 }

</bundles_post_ra>
